<compile_context>
chip_gen: v6e
topology: v6e:2x2x1
jax: 0.10.0
libtpu: 0.0.40
codegen_flags: <defaults>
</compile_context>

<pallas_src>
import jax
import jax.numpy as jnp
from jax.experimental import pallas as pl
from jax.experimental.pallas import tpu as pltpu


def _round_up(v, m):
    return ((v + m - 1) // m) * m


def _round_down(v, m):
    return max(m, (v // m) * m)


def _scale_skip_kernel(p_ref, x_ref, y_ref, o_ref):
    # p_ref: (R, 3) per-row f32 params [x_scale, y_scale, fused_bias].
    # x_ref / y_ref / o_ref: (R, L) data tiles; params broadcast over lanes.
    # Compute in f32 regardless of I/O dtype (upcast is free under the HBM
    # bound; v5e's VPU has no bf16 VALU anyway).
    p = p_ref[...]
    xs = p[:, 0:1]
    ys = p[:, 1:2]
    b = p[:, 2:3]
    x = x_ref[...].astype(jnp.float32)
    y = y_ref[...].astype(jnp.float32)
    o_ref[...] = (x * xs + y * ys + b).astype(o_ref.dtype)


def scale_skip_2d(x, y, x_scale, x_bias, y_scale, y_bias, *,
                  row_tile=256, lane_tile=2048, out_dtype=None,
                  min_pallas_bytes=2 * 1024 * 1024):
    """ScaleSkip2D forward.

    x, y: (N, C, H, W).  Params: any shape flattening to (C,).
    Compute is f32; output dtype defaults to x.dtype (pass jnp.bfloat16 and
    bf16 inputs to halve HBM traffic).
    """
    N, C, H, W = x.shape
    out_dtype = jnp.dtype(out_dtype or x.dtype)
    rows, cols = N * C, H * W

    xs = x_scale.reshape(C).astype(jnp.float32)
    ys = y_scale.reshape(C).astype(jnp.float32)
    xb = x_bias.reshape(C).astype(jnp.float32)
    yb = y_bias.reshape(C).astype(jnp.float32)

    x_item = jnp.dtype(x.dtype).itemsize
    y_item = jnp.dtype(y.dtype).itemsize
    out_item = out_dtype.itemsize
    stream_bytes_per_elem = x_item + y_item + out_item

    # Tiny activations: a fused XLA elementwise op beats pallas_call launch
    # plus pipeline-prologue overhead.
    if rows * cols * stream_bytes_per_elem < min_pallas_bytes:
        out = ((x.astype(jnp.float32) * xs[None, :, None, None]
                + xb[None, :, None, None])
               + (y.astype(jnp.float32) * ys[None, :, None, None]
                  + yb[None, :, None, None]))
        return out.astype(out_dtype)

    # Row-flattened layout: (N*C, H*W).  Ragged shapes are left as-is; Pallas
    # masks the over-hanging edge blocks (no extra HBM passes from padding).
    x2 = x.reshape(rows, cols)
    y2 = y.reshape(rows, cols)

    # Per-row params with the two biases folded (3 VPU ops/elem), packed into
    # one (rows, 3) f32 array -> one tiny param DMA per row tile.
    params = jnp.stack(
        [jnp.broadcast_to(xs[None, :], (N, C)).reshape(rows),
         jnp.broadcast_to(ys[None, :], (N, C)).reshape(rows),
         jnp.broadcast_to((xb + yb)[None, :], (N, C)).reshape(rows)],
        axis=1)

    # --- Tile selection --------------------------------------------------
    # Double-buffered working-set budget that fits every generation's VMEM
    # (v7x has only 64 MiB physical per TC; scoped default is 32 MiB).
    vmem_budget = 24 * 1024 * 1024
    buffered_per_elem = 2 * stream_bytes_per_elem  # default 2-deep pipeline

    br = min(row_tile, _round_up(rows, 8))
    if br * cols * buffered_per_elem <= vmem_budget:
        # Full-width lane tiles: each block is one contiguous HBM region, so
        # auto-generated DMAs are unit-stride and stores stay lane-dense.
        bc = cols
    else:
        bc = min(lane_tile, _round_up(cols, 128))
        while br > 8 and br * bc * buffered_per_elem > vmem_budget:
            br = _round_down(br // 2, 8)
        while bc > 128 and br * bc * buffered_per_elem > vmem_budget:
            bc = _round_down(bc // 2, 128)

    # v7x has 2 TensorCores: make sure at least one "parallel" grid axis has
    # >= 2 blocks so the second core is not idle.  No-op on v5e/v6e.
    if pl.cdiv(rows, br) * pl.cdiv(cols, bc) < 2:
        if rows > 8:
            br = max(8, _round_up(pl.cdiv(rows, 2), 8))
        elif cols > 128:
            bc = max(128, _round_up(pl.cdiv(cols, 2), 128))

    grid = (pl.cdiv(rows, br), pl.cdiv(cols, bc))

    data_block = (br, bc)
    param_spec = pl.BlockSpec((br, 3), lambda i, j: (i, 0))

    footprint = br * bc * buffered_per_elem + 2 * br * 3 * 4
    vmem_limit = int(min(48 * 1024 * 1024,
                         max(16 * 1024 * 1024, footprint * 5 // 4)))

    cost = pl.CostEstimate(
        flops=4 * rows * cols,
        transcendentals=0,
        bytes_accessed=rows * cols * stream_bytes_per_elem + params.size * 4,
    )

    out = pl.pallas_call(
        _scale_skip_kernel,
        out_shape=jax.ShapeDtypeStruct((rows, cols), out_dtype),
        grid_spec=pltpu.PrefetchScalarGridSpec(
            num_scalar_prefetch=0,
            grid=grid,
            in_specs=[param_spec,
                      pl.BlockSpec(data_block, lambda i, j: (i, j)),
                      pl.BlockSpec(data_block, lambda i, j: (i, j))],
            out_specs=pl.BlockSpec(data_block, lambda i, j: (i, j)),
        ),
        compiler_params=pltpu.CompilerParams(
            dimension_semantics=("parallel", "parallel"),
            vmem_limit_bytes=vmem_limit,
        ),
        cost_estimate=cost,
    )(params, x2, y2)

    return out.reshape(N, C, H, W)


def _trunc_normal(key, shape, mean, std):
    # Matches torch.nn.init.trunc_normal_(t, mean, std, a=-2, b=2).
    lo = (-2.0 - mean) / std
    hi = (2.0 - mean) / std
    z = jax.random.truncated_normal(key, lo, hi, shape, dtype=jnp.float32)
    return mean + std * z


def _reference(x, y, xs, xb, ys, yb):
    return ((x * xs[None, :, None, None] + xb[None, :, None, None])
            + (y * ys[None, :, None, None] + yb[None, :, None, None]))


if __name__ == "__main__":
    key = jax.random.PRNGKey(0)
    size = 0.01  # std for parameter init, as in the module

    # ---- Case 1: aligned f32 (module-scale small shapes) -----------------
    N, C, H, W = 2, 4, 16, 16
    k_x, k_y, k_xs, k_ys, k_xb, k_yb, k2 = jax.random.split(key, 7)
    x = jax.random.normal(k_x, (N, C, H, W), dtype=jnp.float32)
    y = jax.random.normal(k_y, (N, C, H, W), dtype=jnp.float32)
    x_skipscale = _trunc_normal(k_xs, (C,), 1.0, size)
    y_skipscale = _trunc_normal(k_ys, (C,), 1.0, size)
    x_skipbias = _trunc_normal(k_xb, (C,), 0.0, size)
    y_skipbias = _trunc_normal(k_yb, (C,), 0.0, size)

    out = scale_skip_2d(x, y, x_skipscale, x_skipbias, y_skipscale,
                        y_skipbias, min_pallas_bytes=0)  # force Pallas path
    out = jax.block_until_ready(out)
    ref = _reference(x, y, x_skipscale, x_skipbias, y_skipscale, y_skipbias)
    assert out.shape == (N, C, H, W)
    assert jnp.allclose(out, ref, atol=1e-6, rtol=1e-6)

    # ---- Case 2: ragged shapes (no padding, Pallas edge-block masking) ---
    Nr, Cr, Hr, Wr = 2, 3, 10, 12
    kr_x, kr_y, kr_p = jax.random.split(k2, 3)
    xr = jax.random.normal(kr_x, (Nr, Cr, Hr, Wr), dtype=jnp.float32)
    yr = jax.random.normal(kr_y, (Nr, Cr, Hr, Wr), dtype=jnp.float32)
    kp1, kp2, kp3, kp4 = jax.random.split(kr_p, 4)
    xs_r = _trunc_normal(kp1, (Cr,), 1.0, size)
    ys_r = _trunc_normal(kp2, (Cr,), 1.0, size)
    xb_r = _trunc_normal(kp3, (Cr,), 0.0, size)
    yb_r = _trunc_normal(kp4, (Cr,), 0.0, size)
    out_r = scale_skip_2d(xr, yr, xs_r, xb_r, ys_r, yb_r, min_pallas_bytes=0)
    out_r = jax.block_until_ready(out_r)
    ref_r = _reference(xr, yr, xs_r, xb_r, ys_r, yb_r)
    assert jnp.allclose(out_r, ref_r, atol=1e-6, rtol=1e-6)

    # ---- Case 3: bf16 I/O (f32 compute inside the kernel) ----------------
    x16 = x.astype(jnp.bfloat16)
    y16 = y.astype(jnp.bfloat16)
    out16 = scale_skip_2d(x16, y16, x_skipscale, x_skipbias, y_skipscale,
                          y_skipbias, out_dtype=jnp.bfloat16,
                          min_pallas_bytes=0)
    out16 = jax.block_until_ready(out16)
    ref16 = _reference(x16.astype(jnp.float32), y16.astype(jnp.float32),
                       x_skipscale, x_skipbias, y_skipscale, y_skipbias)
    assert jnp.allclose(out16.astype(jnp.float32), ref16, atol=1e-2, rtol=1e-2)

    print("KERNEL_OK")
</pallas_src>

<mosaic_0001>
module attributes {stable_mosaic.version = 11 : i64} {
  func.func @_scale_skip_kernel(%arg0: i32, %arg1: i32, %arg2: memref<8x3xf32, #tpu.memory_space<vmem>>, %arg3: memref<8x128xf32, #tpu.memory_space<vmem>>, %arg4: memref<8x128xf32, #tpu.memory_space<vmem>>, %arg5: memref<8x128xf32, #tpu.memory_space<vmem>>) attributes {dimension_semantics = [#tpu.dimension_semantics<parallel>, #tpu.dimension_semantics<parallel>], iteration_bounds = array<i64: 1, 2>, scalar_prefetch = 0 : i64, scratch_operands = 0 : i64, tpu.core_type = #tpu.core_type<tc>, window_params = [{transform_indices = @transform_0, window_bounds = array<i64: 8, 3>}, {transform_indices = @transform_1, window_bounds = array<i64: 8, 128>}, {transform_indices = @transform_2, window_bounds = array<i64: 8, 128>}, {transform_indices = @transform_3, window_bounds = array<i64: 8, 128>}]} {
    %c0 = arith.constant 0 : index
    %c0_0 = arith.constant 0 : index
    %0 = vector.load %arg2[%c0, %c0_0] : memref<8x3xf32, #tpu.memory_space<vmem>>, vector<8x3xf32>
    %1 = vector.extract_strided_slice %0 {offsets = [0, 0], sizes = [8, 1], strides = [1, 1]} : vector<8x3xf32> to vector<8x1xf32>
    %2 = vector.extract_strided_slice %0 {offsets = [0, 1], sizes = [8, 1], strides = [1, 1]} : vector<8x3xf32> to vector<8x1xf32>
    %3 = vector.extract_strided_slice %0 {offsets = [0, 2], sizes = [8, 1], strides = [1, 1]} : vector<8x3xf32> to vector<8x1xf32>
    %c0_1 = arith.constant 0 : index
    %c0_2 = arith.constant 0 : index
    %4 = vector.load %arg3[%c0_1, %c0_2] : memref<8x128xf32, #tpu.memory_space<vmem>>, vector<8x128xf32>
    %c0_3 = arith.constant 0 : index
    %c0_4 = arith.constant 0 : index
    %5 = vector.load %arg4[%c0_3, %c0_4] : memref<8x128xf32, #tpu.memory_space<vmem>>, vector<8x128xf32>
    %6 = vector.broadcast %1 : vector<8x1xf32> to vector<8x128xf32>
    %7 = arith.mulf %4, %6 : vector<8x128xf32>
    %8 = vector.broadcast %2 : vector<8x1xf32> to vector<8x128xf32>
    %9 = arith.mulf %5, %8 : vector<8x128xf32>
    %10 = arith.addf %7, %9 : vector<8x128xf32>
    %11 = vector.broadcast %3 : vector<8x1xf32> to vector<8x128xf32>
    %12 = arith.addf %10, %11 : vector<8x128xf32>
    %c0_5 = arith.constant 0 : index
    %c0_6 = arith.constant 0 : index
    %13 = vector.load %arg5[%c0_5, %c0_6] : memref<8x128xf32, #tpu.memory_space<vmem>>, vector<8x128xf32>
    tpu.vector_store %arg5[%c0_5, %c0_6], %12 {strides = array<i32>} : memref<8x128xf32, #tpu.memory_space<vmem>>, vector<8x128xf32>,
    return
  }
  func.func @transform_0(%arg0: i32, %arg1: i32) -> (i32, i32) {
    %c0_i32 = arith.constant 0 : i32
    %c0_i32_0 = arith.constant 0 : i32
    return %arg0, %c0_i32 : i32, i32
  }
  func.func @transform_1(%arg0: i32, %arg1: i32) -> (i32, i32) {
    %c0_i32 = arith.constant 0 : i32
    return %arg0, %arg1 : i32, i32
  }
  func.func @transform_2(%arg0: i32, %arg1: i32) -> (i32, i32) {
    %c0_i32 = arith.constant 0 : i32
    return %arg0, %arg1 : i32, i32
  }
  func.func @transform_3(%arg0: i32, %arg1: i32) -> (i32, i32) {
    %c0_i32 = arith.constant 0 : i32
    return %arg0, %arg1 : i32, i32
  }
}

</mosaic_0001>

<bundles_post_ra>
// kernel: tpu_custom_call.1
= control target key start
LH: loop header
LB: loop body
LE: loop exit
PB: predicated region body
PF: predicated region fallthrough
CT: control target
= control target key end

     0   :  { %8 = vsyncpa [#allocation3], 0  ;;  %s849_s0 = inlined_call_operand.vmem [shape: f32[8,3], index: 0, kind: input, shape index: {}]   ;;  %s850_s1 = inlined_call_operand.hbm [shape: f32[8,256], index: 1, kind: input, shape index: {}]   ;;  %s851_s2 = inlined_call_operand.hbm [shape: f32[8,256], index: 2, kind: input, shape index: {}]   ;;  %s852_s3 = inlined_call_operand.hbm [shape: f32[8,256], index: 3, kind: output, shape index: {}]  }
   0x1   :  { %10 = vsyncpa [#allocation3 + $0x1], 0 }
   0x2   :  { %11 = vsyncpa [#allocation6], 0 }
   0x3   :  { %13 = vsyncpa [#allocation6 + $0x1], 0 }
   0x4   :  { %14 = vsyncpa [#allocation4], 0 }
   0x5   :  { %16 = vsyncpa [#allocation4 + $0x1], 0  ;;  %s680_s12 = smov 0   ;;  %s682_s13 = smov 0  }
   0x6   :  { %s684_s14 = smov 0   ;;  %s686_s15 = smov 0  }
   0x7   :  { %s688_s16 = smov 0   ;;  %s690_s17 = smov 0  }
   0x8 LB: > { %s421_s18 = sadd.s32 4294967295, %s652_s17   ;;  %s422_s19 = sadd.s32 4294967294, %s652_s17   ;;  %s652_s17 = sphi %s690_s17, %s22_s17   ;;  %s648_s16 = sphi %s688_s16, %s864_s16   ;;  %s644_s15 = sphi %s686_s15, %s863_s15   ;;  %s640_s14 = sphi %s684_s14, %s862_s14   ;;  %s636_s13 = sphi %s682_s13, %s861_s13   ;;  %s632_s12 = sphi %s680_s12, %s860_s12  }
   0x9   : > { %s31_s20 = sadd.s32 1, %s648_s16  ;;  %s69_s21 = sadd.s32 1, %s640_s14 }
   0xa   : > { %p32_p0 = scmp.ge.s32.totalorder %s31_s20, 2  ;;  %p76_p1 = scmp.ne.s32.totalorder %s640_s14, %s636_s13 }
   0xb   : > { %p77_p2 = scmp.eq.s32.totalorder %s652_s17, 0  ;;  %p82_p3 = scmp.ne.s32.totalorder %s636_s13, %s632_s12 }
   0xc   : > { %s866_s20 = smov (%p32_p0, %s31_s20), 0  ;;  %p83_p5 = scmp.eq.s32.totalorder %s421_s18, 0 }
   0xd   : > { %p721_p4 = por %p77_p2, %p76_p1  ;;  %s65_s23 = ssub.s32 %s648_s16, %s866_s20 }
   0xe   : > { %p136_p6 = scmp.eq.s32.totalorder %s421_s18, 1  ;;  %p67_p7 = scmp.eq.s32.totalorder %s65_s23, 0 }
   0xf   : > { %p727_p8 = por %p83_p5, %p82_p3  ;;  %p142_p10 = scmp.eq.s32.totalorder %s422_s19, 1 }
  0x10   : > { %p731_p9 = por %p136_p6, %p76_p1  ;;  %p455_p13 = scmp.lt.s32.totalorder %s652_s17, 2 }
  0x11   : > { %s736_s26 = scalar_select %p67_p7, %s640_s14, %s69_s21  }
  0x12   : > { %p738_p11 = por %p142_p10, %p82_p3  ;;  %s745_s28 = sand.u32 1, %s640_s14  }
  0x13   : > { %s426_s29 = sshll.u32 %s745_s28, 3  ;;  %s427_s30 = sshll.u32 %s648_s16, 7 }
  0x14   : > { %s180_s6 = scalar_lea.hbm %s850_s1, %s427_s30  ;;  %s173_s7 = scalar_lea.vmem [#allocation2], %s426_s29 }
  0x15   : > { %s182_s8 = sshll.u32 %s173_s7, 4  ;;  %p754_p0 = pnand %p455_p13, %p721_p4  ;;  %s183_s8 = int_to_ptr.vmem [resolvable:$true] %s182_s8 }
  0x16   : > { %p430_p1 = scmp.ge.s32.totalorder %s652_s17, 1  ;;  %p207_p2 = scmp.lt.s32.totalorder %s652_s17, 3 }
  0x17   : > { %s170_s10 = scalar_lea.sflag [#allocation3], %s745_s28  ;;  %p514_p3 = pneg %p754_p0 }
  0x18   : > { %s525_s11 = scalar_lea.vmem %s183_s8, 128  ;;  %s654_s18 = smov [#allocation2]  }
  0x19   : > { %p526_p5 = scmp.ne.s32.totalorder %s183_s8, %s525_s11  ;;  %s530_s19 = sshll.u32 %s654_s18, 4  ;;  %s531_s19 = int_to_ptr.vmem [resolvable:$false] %s530_s19 }
  0x1a   : > { %s532_s21 = scalar_lea.vmem %s531_s19, 256  ;;  %p533_p4 = scmp.lt.s32.totalorder %s183_s8, %s531_s19 }
  0x1b   : > { %p528_p6 = pnand %p526_p5, %p514_p3  ;;  %p534_p10 = scmp.lt.s32.totalorder %s532_s21, %s525_s11 }
  0x1d   : > { %p529_p7 = pneg %p528_p6  ;;  %p535_p13 = por %p534_p10, %p533_p4 }
  0x1f   : > { %p536_p12 = pnand %p535_p13, %p529_p7 }
  0x21   : > { %539 = shalt.err (!%p536_p12)
}
  0x22   : > { %447 = dma.hbm_to_vmem [thread:$0]  (!%p754_p0), %s180_s6, 128, %s183_s8, %s170_s10  }
  0x23   : > { %p772_p5 = pnand %p430_p1, %p207_p2  ;;  %s200_s5 = scalar_lea.hbm %s851_s2, %s427_s30 }
  0x24   : > { %s193_s7 = scalar_lea.vmem [#allocation5], %s426_s29  ;;  %s190_s18 = scalar_lea.sflag [#allocation6], %s745_s28 }
  0x25   : > { %s202_s11 = sshll.u32 %s193_s7, 4  ;;  %s655_s6 = smov [#allocation5]   ;;  %s203_s11 = int_to_ptr.vmem [resolvable:$true] %s202_s11 }
  0x26   : > { %s553_s19 = scalar_lea.vmem %s203_s11, 128  ;;  %s558_s8 = sshll.u32 %s655_s6, 4  ;;  %s559_s8 = int_to_ptr.vmem [resolvable:$false] %s558_s8 }
  0x27   : > { %p554_p12 = scmp.ne.s32.totalorder %s203_s11, %s553_s19  ;;  %s560_s10 = scalar_lea.vmem %s559_s8, 256 }
  0x28   : > { %p561_p1 = scmp.lt.s32.totalorder %s203_s11, %s559_s8  ;;  %p562_p2 = scmp.lt.s32.totalorder %s560_s10, %s553_s19 }
  0x29   : > { %p556_p6 = pnand %p554_p12, %p514_p3 }
  0x2a   : > { %p563_p4 = por %p562_p2, %p561_p1 }
  0x2b   : > { %p557_p7 = pneg %p556_p6 }
  0x2d   : > { %p564_p10 = pnand %p563_p4, %p557_p7 }
  0x2f   : > { %567 = shalt.err (!%p564_p10)
}
  0x30   : > { %450 = dma.hbm_to_vmem [thread:$0]  (!%p754_p0), %s200_s5, 128, %s203_s11, %s190_s18  }
  0x31   : > { %211 = sbr.rel (%p772_p5) target bundleno = 207 (0xcf), region = 32  ;;  %s788_s28 = sand.u32 (!%p772_p5), 1, %s636_s13  }
  0x32   : > { %s791_s29 = sshll.u32 (!%p772_p5), %s788_s28, 3  ;;  %s214_s30 = scalar_lea.sflag (!%p772_p5), [#allocation3], %s788_s28 }
  0x33   : > { %s217_s21 = scalar_lea.vmem (!%p772_p5), [#allocation2], %s791_s29 }
  0x36   : > { %619 = dma.done.wait (%p727_p8), %s214_s30, 128  }
  0x37   : > { %621 = vsyncadd (%p727_p8), %s214_s30, 4294967168  ;;  %s223_s9 = scalar_lea.sflag [#allocation6], %s788_s28  ;;  %s226_s22 = scalar_lea.vmem [#allocation5], %s791_s29 }
  0x38   : > { %623 = dma.done.wait (%p727_p8), %s223_s9, 128  }
  0x39   : > { %625 = vsyncadd (%p727_p8), %s223_s9, 4294967168  ;;  %v656_v0 = vmov 0   ;;  %v657_v1 = vmov 2   ;;  %v262_v2 = vld [vmem:[%s849_s0] sm:$0xff]  ;;  %v658_v3 = vmov 1   ;;  %v264_v6 = vld [vmem:[%s226_s22] sm:$0xff] }
  0x3a   : > { %508 = vset.pattern.permute.xlu0 %v656_v0  ;;  %510 = vset.pattern.permute.xlu1 %v657_v1  ;;  %v263_v5 = vld [vmem:[%s217_s21] sm:$0xff]  ;;  %s435_s24 = sshll.u32 %s644_s15, 7  ;;  %s257_s5 = scalar_lea.vmem [#allocation7], %s791_s29 }
  0x3b   : > { %267 = vperm.xlu0 %508, %v262_v2   ;;  %278 = vperm.xlu1 %510, %v262_v2   ;;  %s299_s7 = sshll.u32 %s257_s5, 4  ;;  %s297_s19 = scalar_lea.hbm %s852_s3, %s435_s24  ;;  %s300_s7 = int_to_ptr.vmem [resolvable:$true] %s299_s7 }
  0x3c   : > { %s284_s6 = scalar_lea.sflag [#allocation4], %s788_s28  ;;  %s568_s8 = scalar_lea.vmem %s300_s7, 128 }
  0x3d   : > { %p569_p8 = scmp.ne.s32.totalorder %s300_s7, %s568_s8  ;;  %s659_s10 = smov [#allocation7]  }
  0x3e   : > { %s572_s30 = sshll.u32 %s659_s10, 4  ;;  %s573_s30 = int_to_ptr.vmem [resolvable:$false] %s572_s30 }
  0x3f   : > { %509 = vset.pattern.permute.xlu0 %v658_v3  ;;  %p570_p0 = pnand %p569_p8, %p731_p9  ;;  %s574_s15 = scalar_lea.vmem %s573_s30, 256 }
  0x40   : > { %272 = vperm.xlu0 %509, %v262_v2   ;;  %p575_p13 = scmp.lt.s32.totalorder %s300_s7, %s573_s30  ;;  %p576_p5 = scmp.lt.s32.totalorder %s574_s15, %s568_s8 }
  0x41   : > { %p571_p3 = pneg %p570_p0 }
  0x42   : > { %p577_p12 = por %p576_p5, %p575_p13 }
  0x44   : > { %511 = vset.pattern.permute.xlu0 %v657_v1  ;;  %p578_p6 = pnand %p577_p12, %p571_p3 }
  0xb6   : > { %v268_v4 = vpop.permute.xlu0 %267  ;;  %v279_v10 = vpop.permute.xlu1 %278 }
  0xb7   : > { %v270_v8 = vmul.f32 %v268_v4, %v263_v5 }
  0xbb   : > { %v273_v7 = vpop.permute.xlu0 %272 }
  0xbc   : > { %v275_v9 = vmul.f32 %v273_v7, %v264_v6 }
  0xbe   : > { %v276_v11 = vadd.f32 %v275_v9, %v270_v8 }
  0xc0   : > { %v281_v12 = vadd.f32 %v279_v10, %v276_v11 }
  0xc2   : > { %282 = vst [vmem:[%s257_s5] sm:$0xff] %v281_v12 }
  0xc3   : > { %581 = shalt.err (!%p578_p6)
}
  0xc4   : > { %s582_s29 = scalar_lea.hbm %s297_s19, 128  ;;  %s586_s9 = scalar_lea.hbm %s852_s3, 256 }
  0xc5   : > { %p583_p7 = scmp.ne.s32.totalorder %s297_s19, %s582_s29  ;;  %p587_p4 = scmp.lt.s32.totalorder %s297_s19, %s852_s3 }
  0xc6   : > { %p588_p10 = scmp.lt.s32.totalorder %s586_s9, %s582_s29 }
  0xc7   : > { %p584_p1 = pnand %p583_p7, %p731_p9 }
  0xc8   : > { %p589_p8 = por %p588_p10, %p587_p4 }
  0xc9   : > { %p585_p2 = pneg %p584_p1 }
  0xcb   : > { %p590_p0 = pnand %p589_p8, %p585_p2 }
  0xcd   : > { %593 = shalt.err (!%p590_p0)
}
  0xce   : > { %442 = dma.vmem_to_hbm [thread:$0]  (%p731_p9), %s300_s7, 128, %s297_s19, %s284_s6  }
  0xcf PF: > { %s311_s4 = sand.u32 1, %s632_s12   ;;  %p859_p3 = scmp.ge.s32.totalorder %s652_s17, 2 }
  0xd0   : > { %s312_s24 = scalar_lea.sflag [#allocation4], %s311_s4 }
  0xd1   : > { %p452_p13 = pnand %p859_p3, %p738_p11 }
  0xd3   : > { %p453_p5 = pneg %p452_p13 }
  0xd5   : > { %627 = dma.done.wait (%p453_p5), %s312_s24, 128  }
  0xd6   : > { %629 = vsyncadd (%p453_p5), %s312_s24, 4294967168  ;;  %s22_s17 = sadd.s32 1, %s652_s17   ;;  %s860_s12 = smov %s636_s13 }
  0xd7   : > { %p19_p12 = scmp.ge.s32.totalorder %s22_s17, 4   ;;  %s861_s13 = smov %s640_s14 }
  0xd8   : > { %s862_s14 = smov %s736_s26  ;;  %s863_s15 = smov %s648_s16 }
  0xd9   : > { %s864_s16 = smov %s866_s20  ;;  %21 = sbr.rel (!%p19_p12) target bundleno = 8 (0x8), region = 93 }
  0xde   :  { %317 = vsyncpa [#allocation3], 1 }
  0xdf   :  { %319 = vsyncpa [#allocation3 + $0x1], 1 }
  0xe0   :  { %320 = vsyncpa [#allocation6], 1 }
  0xe1   :  { %322 = vsyncpa [#allocation6 + $0x1], 1 }
  0xe2   :  { %323 = vsyncpa [#allocation4], 1 }
  0xe3   :  { %325 = vsyncpa [#allocation4 + $0x1], 1 }

</bundles_post_ra>
